<compile_context>
chip_gen: v7x
topology: tpu7x:2x2x1
jax: 0.10.0
libtpu: 0.0.40
codegen_flags: <defaults>
</compile_context>

<pallas_src>
import math

import jax
import jax.numpy as jnp
from jax.experimental import pallas as pl
from jax.experimental.pallas import tpu as pltpu


# ----------------------------- fused Pallas kernel ---------------------------
def fused_encoder_kernel(x_ref, h_ref, c_ref, w_ih0_ref, w_hh0_ref,
                         w_rest_ref, b_ref, new_h_ref, new_c_ref):
    """All 2*num_layers LSTMCell steps in one kernel, everything in VMEM.

    x_ref      : (B, A)           f32   input at native alphabet width
    h_ref      : (L, B, H)        f32   stored hidden states per layer
    c_ref      : (L, B, H)        f32   stored cell states per layer
    w_ih0_ref  : (A, 4H)          bf16  layer-0 W_ih^T, gate order [i, f, o, g]
    w_hh0_ref  : (H, 4H)          bf16  layer-0 W_hh^T
    w_rest_ref : (L-1, 3, H, 4H)  bf16  per layer>=1: [W_ih^T, W_hh^T, W_ih^T+W_hh^T]
                                        (dummy array when L == 1; never read)
    b_ref      : (L, 1, 4H)       f32   b_ih + b_hh, gate order [i, f, o, g]
    new_h_ref  : (L, B, H)        f32   updated hidden states (aliases h_ref in HBM)
    new_c_ref  : (L, B, H)        f32   updated cell states  (aliases c_ref in HBM)
    """
    L, _, H = h_ref.shape

    def lstm_nonlin(gates, c):
        # Gate order [i, f, o, g]: one contiguous sigmoid slab + one tanh slab.
        # sigmoid(z) = 0.5*tanh(0.5*z) + 0.5 keeps the nonlinearity on the EUP
        # (no f32 divide on the VALU), at full precision.
        sig = 0.5 * jnp.tanh(0.5 * gates[:, :3 * H]) + 0.5
        g = jnp.tanh(gates[:, 3 * H:])
        i_g = sig[:, 0 * H:1 * H]
        f_g = sig[:, 1 * H:2 * H]
        o_g = sig[:, 2 * H:3 * H]
        c_new = f_g * c + i_g * g
        h_new = o_g * jnp.tanh(c_new)
        return h_new, c_new

    # ---- layer 0: both steps see the same x, so its projection (and bias) is
    #      computed once; only h @ W_hh0 runs per step, with a bit-identical
    #      RHS across both steps. ----
    gx0 = jnp.dot(x_ref[...].astype(jnp.bfloat16), w_ih0_ref[...],
                  preferred_element_type=jnp.float32) + b_ref[0]
    w_hh0 = w_hh0_ref[...]
    h, c = h_ref[0], c_ref[0]
    for _ in range(2):
        gates = gx0 + jnp.dot(h.astype(jnp.bfloat16), w_hh0,
                              preferred_element_type=jnp.float32)
        h, c = lstm_nonlin(gates, c)
    new_h_ref[0] = h
    new_c_ref[0] = c

    # ---- layers >= 1 (Python-unrolled; L is small). Reads of layer l always
    #      precede writes of layer l, so in-place state aliasing is safe. ----
    for layer in range(1, L):
        r = layer - 1
        b = b_ref[layer]
        # step 1: input = h from previous layer, state = stored (h_l, c_l)
        gates = (jnp.dot(h.astype(jnp.bfloat16), w_rest_ref[r, 0],
                         preferred_element_type=jnp.float32)
                 + jnp.dot(h_ref[layer].astype(jnp.bfloat16), w_rest_ref[r, 1],
                           preferred_element_type=jnp.float32)
                 + b)
        h1, c1 = lstm_nonlin(gates, c_ref[layer])
        # step 2: input == hidden == h1, so the fused (2H, 4H) matmul collapses
        # to one K=H matmul with the pre-summed weight W_ih^T + W_hh^T.
        gates = jnp.dot(h1.astype(jnp.bfloat16), w_rest_ref[r, 2],
                        preferred_element_type=jnp.float32) + b
        h, c = lstm_nonlin(gates, c1)
        new_h_ref[layer] = h
        new_c_ref[layer] = c


# ------------------------------ forward wrapper -------------------------------
@jax.jit
def selfies_encoder_forward(x, h_all, c_all, w_ih0, w_hh0, w_rest, b_all):
    """Mirrors SELFIESTransformerEncoder.forward (use_cell=True)."""
    L, B, H = h_all.shape
    A = x.shape[-1]

    vmem = pl.BlockSpec(memory_space=pltpu.MemorySpace.VMEM)

    flops = 2 * B * A * 4 * H                      # x projection, once
    flops += 2 * 2 * B * H * 4 * H                 # layer 0: two h @ W_hh steps
    flops += (L - 1) * 3 * 2 * B * H * 4 * H       # layers >= 1: 2 + 1 dots
    transcendentals = 2 * L * 5 * B * H            # tanh slabs per step
    nbytes = sum(int(a.size) * a.dtype.itemsize
                 for a in (x, h_all, c_all, w_ih0, w_hh0, w_rest, b_all))
    nbytes += 2 * int(h_all.size) * 4              # new_h / new_c writeback

    new_h, new_c = pl.pallas_call(
        fused_encoder_kernel,
        in_specs=[vmem] * 7,
        out_specs=(vmem, vmem),
        out_shape=(
            jax.ShapeDtypeStruct((L, B, H), jnp.float32),
            jax.ShapeDtypeStruct((L, B, H), jnp.float32),
        ),
        # h_all -> new_h, c_all -> new_c are updated in place. Callers that
        # thread the state through time can additionally use
        # jax.jit(..., donate_argnums=(1, 2)) to make this copy-free.
        input_output_aliases={1: 0, 2: 1},
        cost_estimate=pl.CostEstimate(
            flops=int(flops),
            transcendentals=int(transcendentals),
            bytes_accessed=int(nbytes)),
    )(x, h_all, c_all, w_ih0, w_hh0, w_rest, b_all)
    return new_h[L - 1], new_h, new_c


# ------------------------- parameter construction / packing -------------------
def init_lstm_cell_params(key, input_size, hidden_size):
    """PyTorch-style LSTMCell init: U(-1/sqrt(H), 1/sqrt(H)), gate order [i,f,g,o]."""
    k = 1.0 / math.sqrt(hidden_size)
    kw1, kw2, kb1, kb2 = jax.random.split(key, 4)
    w_ih = jax.random.uniform(kw1, (4 * hidden_size, input_size), jnp.float32, -k, k)
    w_hh = jax.random.uniform(kw2, (4 * hidden_size, hidden_size), jnp.float32, -k, k)
    b_ih = jax.random.uniform(kb1, (4 * hidden_size,), jnp.float32, -k, k)
    b_hh = jax.random.uniform(kb2, (4 * hidden_size,), jnp.float32, -k, k)
    return w_ih, w_hh, b_ih, b_hh


def pack_params(torch_params, hidden_size):
    """Pack per-layer PyTorch-layout LSTMCell params into the fused-kernel layout.

    Gate order permuted [i, f, g, o] -> [i, f, o, g].
      layer 0    : W_ih^T kept at native (A, 4H), W_hh^T as (H, 4H).
      layers >= 1: stacked (3, H, 4H) = [W_ih^T, W_hh^T, W_ih^T + W_hh^T]
                   (the summed slab serves the duplicated-input second step).
      biases     : b_ih + b_hh, f32, shape (L, 1, 4H).
    """
    H = hidden_size
    perm = jnp.concatenate([jnp.arange(0, 2 * H),        # i, f
                            jnp.arange(3 * H, 4 * H),    # o
                            jnp.arange(2 * H, 3 * H)])   # g

    w_ih0, w_hh0, b_ih0, b_hh0 = torch_params[0]
    w_ih0_p = w_ih0.T[:, perm].astype(jnp.bfloat16)      # (A, 4H)
    w_hh0_p = w_hh0.T[:, perm].astype(jnp.bfloat16)      # (H, 4H)
    b_list = [(b_ih0 + b_hh0)[perm][None, :]]

    rest = []
    for (w_ih, w_hh, b_ih, b_hh) in torch_params[1:]:
        wi = w_ih.T[:, perm]                             # (H, 4H) f32
        wh = w_hh.T[:, perm]                             # (H, 4H) f32
        ws = wi + wh                                     # folded 2nd-step weight
        rest.append(jnp.stack([wi, wh, ws]).astype(jnp.bfloat16))  # (3, H, 4H)
        b_list.append((b_ih + b_hh)[perm][None, :])

    if rest:
        w_rest = jnp.stack(rest)                         # (L-1, 3, H, 4H) bf16
    else:
        # Dummy placeholder for L == 1; the kernel never reads it.
        w_rest = jnp.zeros((1, 3, 8, 128), jnp.bfloat16)
    b_all = jnp.stack(b_list)                            # (L, 1, 4H) f32
    return w_ih0_p, w_hh0_p, w_rest, b_all


# ------------------------------ references ------------------------------------
def _nonlin_packed_ref(gates, c, H):
    sig = 0.5 * jnp.tanh(0.5 * gates[:, :3 * H]) + 0.5
    g = jnp.tanh(gates[:, 3 * H:])
    c_new = sig[:, H:2 * H] * c + sig[:, :H] * g
    return sig[:, 2 * H:3 * H] * jnp.tanh(c_new), c_new


def forward_packed_ref(x, h_all, c_all, w_ih0, w_hh0, w_rest, b_all):
    """Same math as the kernel (bf16 weights, hoisted gx0, folded 2nd step)."""
    L, _, H = h_all.shape
    gx0 = jnp.dot(x.astype(jnp.bfloat16), w_ih0,
                  preferred_element_type=jnp.float32) + b_all[0]
    h, c = h_all[0], c_all[0]
    for _ in range(2):
        gates = gx0 + jnp.dot(h.astype(jnp.bfloat16), w_hh0,
                              preferred_element_type=jnp.float32)
        h, c = _nonlin_packed_ref(gates, c, H)
    for layer in range(1, L):
        r = layer - 1
        b = b_all[layer]
        gates = (jnp.dot(h.astype(jnp.bfloat16), w_rest[r, 0],
                         preferred_element_type=jnp.float32)
                 + jnp.dot(h_all[layer].astype(jnp.bfloat16), w_rest[r, 1],
                           preferred_element_type=jnp.float32)
                 + b)
        h1, c1 = _nonlin_packed_ref(gates, c_all[layer], H)
        gates = jnp.dot(h1.astype(jnp.bfloat16), w_rest[r, 2],
                        preferred_element_type=jnp.float32) + b
        h, c = _nonlin_packed_ref(gates, c1, H)
    return h


def _cell_native_ref(x, h, c, w_ih, w_hh, b_ih, b_hh):
    """Plain f32 nn.LSTMCell in PyTorch layout / gate order [i, f, g, o]."""
    H = h.shape[-1]
    gates = x @ w_ih.T + h @ w_hh.T + b_ih + b_hh
    i = jax.nn.sigmoid(gates[:, 0 * H:1 * H])
    f = jax.nn.sigmoid(gates[:, 1 * H:2 * H])
    g = jnp.tanh(gates[:, 2 * H:3 * H])
    o = jax.nn.sigmoid(gates[:, 3 * H:4 * H])
    c_new = f * c + i * g
    return o * jnp.tanh(c_new), c_new


def forward_native_ref(x, torch_params, h_all, c_all):
    L = h_all.shape[0]
    h, c = h_all[0], c_all[0]
    h, c = _cell_native_ref(x, h, c, *torch_params[0])
    h, c = _cell_native_ref(x, h, c, *torch_params[0])
    for layer in range(1, L):
        h1, c1 = _cell_native_ref(h, h_all[layer], c_all[layer], *torch_params[layer])
        h, c = _cell_native_ref(h1, h1, c1, *torch_params[layer])
    return h


# ----------------------------------- main --------------------------------------
if __name__ == "__main__":
    # Synthetic sizes (helper.alphabet is not available; pick a small alphabet).
    BATCH = 8
    ALPHABET_SIZE = 32        # stand-in for helper.alphabet_size
    N_STATE_NEURONS = 128     # n_state_neurons (bidirectional=False), lane-aligned
    NUM_LAYERS = 2            # exercises both the layer-0 path and the i>=1 loop

    key = jax.random.PRNGKey(0)
    k_x, k_p = jax.random.split(key)

    # Input token encoding of shape (batch, alphabet_size).
    x = jax.random.normal(k_x, (BATCH, ALPHABET_SIZE), jnp.float32)

    # Per-layer LSTMCell parameters (layer 0: alphabet->H, layers >= 1: H->H).
    param_keys = jax.random.split(k_p, NUM_LAYERS)
    torch_params = []
    for layer in range(NUM_LAYERS):
        in_size = ALPHABET_SIZE if layer == 0 else N_STATE_NEURONS
        torch_params.append(
            init_lstm_cell_params(param_keys[layer], in_size, N_STATE_NEURONS))

    w_ih0, w_hh0, w_rest, b_all = pack_params(torch_params, N_STATE_NEURONS)

    # reset_hidden_state(): zero (h, c) per layer.
    h_all = jnp.zeros((NUM_LAYERS, BATCH, N_STATE_NEURONS), jnp.float32)
    c_all = jnp.zeros_like(h_all)

    out, new_h, new_c = selfies_encoder_forward(
        x, h_all, c_all, w_ih0, w_hh0, w_rest, b_all)
    out = jax.block_until_ready(out)
    assert out.shape == (BATCH, N_STATE_NEURONS)
    assert new_h.shape == h_all.shape and new_c.shape == c_all.shape

    # 1) Exact-math reference (same bf16 / packed-gate / folded formulation).
    ref_packed = forward_packed_ref(
        x, jnp.zeros_like(h_all), jnp.zeros_like(c_all),
        w_ih0, w_hh0, w_rest, b_all)
    assert jnp.allclose(out, ref_packed, atol=5e-3, rtol=5e-3), \
        "mismatch vs packed (bf16) reference"

    # 2) Semantics check vs the plain f32 PyTorch-layout reference (bf16 weights
    #    introduce a small numeric drift; this catches packing/permutation bugs).
    ref_native = forward_native_ref(
        x, torch_params, jnp.zeros_like(h_all), jnp.zeros_like(c_all))
    assert jnp.allclose(out, ref_native, atol=1e-1, rtol=1e-1), \
        "mismatch vs native f32 reference"

    # TODO(synk): the `use_cell=False` nn.LSTM full-sequence branch is not exercised
    # by this forward path and is left unimplemented.
    print("KERNEL_OK")
</pallas_src>

<mosaic_0001>
module attributes {stable_mosaic.version = 11 : i64} {
  func.func @fused_encoder_kernel(%arg0: memref<8x32xf32, #tpu.memory_space<vmem>>, %arg1: memref<2x8x128xf32, #tpu.memory_space<vmem>>, %arg2: memref<2x8x128xf32, #tpu.memory_space<vmem>>, %arg3: memref<32x512xbf16, #tpu.memory_space<vmem>>, %arg4: memref<128x512xbf16, #tpu.memory_space<vmem>>, %arg5: memref<1x3x128x512xbf16, #tpu.memory_space<vmem>>, %arg6: memref<2x1x512xf32, #tpu.memory_space<vmem>>, %arg7: memref<2x8x128xf32, #tpu.memory_space<vmem>>, %arg8: memref<2x8x128xf32, #tpu.memory_space<vmem>>) attributes {dimension_semantics = [], scalar_prefetch = 0 : i64, scratch_operands = 0 : i64, tpu.core_type = #tpu.core_type<tc>} {
    %c0 = arith.constant 0 : index
    %c0_0 = arith.constant 0 : index
    %0 = vector.load %arg0[%c0, %c0_0] : memref<8x32xf32, #tpu.memory_space<vmem>>, vector<8x32xf32>
    %1 = arith.truncf %0 : vector<8x32xf32> to vector<8x32xbf16>
    %c0_1 = arith.constant 0 : index
    %c0_2 = arith.constant 0 : index
    %2 = vector.load %arg3[%c0_1, %c0_2] : memref<32x512xbf16, #tpu.memory_space<vmem>>, vector<32x512xbf16>
    %cst = arith.constant dense<0.000000e+00> : vector<8x512xf32>
    %3 = tpu.matmul %1, %2, %cst {dimension_numbers = #tpu.dot_dimension_numbers<[1], [0], [0], [1], [0, 0, 1, 1], [], []>} : vector<8x32xbf16>, vector<32x512xbf16>, vector<8x512xf32> -> vector<8x512xf32>
    %c0_3 = arith.constant 0 : index
    %c0_4 = arith.constant 0 : index
    %c0_5 = arith.constant 0 : index
    %4 = vector.load %arg6[%c0_3, %c0_4, %c0_5] : memref<2x1x512xf32, #tpu.memory_space<vmem>>, vector<1x1x512xf32>
    %5 = vector.shape_cast %4 : vector<1x1x512xf32> to vector<1x512xf32>
    %6 = vector.broadcast %5 : vector<1x512xf32> to vector<8x512xf32>
    %7 = arith.addf %3, %6 : vector<8x512xf32>
    %c0_6 = arith.constant 0 : index
    %c0_7 = arith.constant 0 : index
    %8 = vector.load %arg4[%c0_6, %c0_7] : memref<128x512xbf16, #tpu.memory_space<vmem>>, vector<128x512xbf16>
    %c0_8 = arith.constant 0 : index
    %c0_9 = arith.constant 0 : index
    %c0_10 = arith.constant 0 : index
    %9 = vector.load %arg1[%c0_8, %c0_9, %c0_10] : memref<2x8x128xf32, #tpu.memory_space<vmem>>, vector<1x8x128xf32>
    %10 = vector.shape_cast %9 : vector<1x8x128xf32> to vector<8x128xf32>
    %c0_11 = arith.constant 0 : index
    %c0_12 = arith.constant 0 : index
    %c0_13 = arith.constant 0 : index
    %11 = vector.load %arg2[%c0_11, %c0_12, %c0_13] : memref<2x8x128xf32, #tpu.memory_space<vmem>>, vector<1x8x128xf32>
    %12 = vector.shape_cast %11 : vector<1x8x128xf32> to vector<8x128xf32>
    %13 = arith.truncf %10 : vector<8x128xf32> to vector<8x128xbf16>
    %cst_14 = arith.constant dense<0.000000e+00> : vector<8x512xf32>
    %14 = tpu.matmul %13, %8, %cst_14 {dimension_numbers = #tpu.dot_dimension_numbers<[1], [0], [0], [1], [0, 0, 1, 1], [], []>} : vector<8x128xbf16>, vector<128x512xbf16>, vector<8x512xf32> -> vector<8x512xf32>
    %15 = arith.addf %7, %14 : vector<8x512xf32>
    %16 = vector.extract_strided_slice %15 {offsets = [0, 0], sizes = [8, 384], strides = [1, 1]} : vector<8x512xf32> to vector<8x384xf32>
    %cst_15 = arith.constant 5.000000e-01 : f32
    %17 = vector.broadcast %cst_15 : f32 to vector<8x384xf32>
    %18 = arith.mulf %17, %16 : vector<8x384xf32>
    %19 = math.tanh %18 : vector<8x384xf32>
    %cst_16 = arith.constant 5.000000e-01 : f32
    %20 = vector.broadcast %cst_16 : f32 to vector<8x384xf32>
    %21 = arith.mulf %20, %19 : vector<8x384xf32>
    %cst_17 = arith.constant 5.000000e-01 : f32
    %22 = vector.broadcast %cst_17 : f32 to vector<8x384xf32>
    %23 = arith.addf %21, %22 : vector<8x384xf32>
    %24 = vector.extract_strided_slice %15 {offsets = [0, 384], sizes = [8, 128], strides = [1, 1]} : vector<8x512xf32> to vector<8x128xf32>
    %25 = math.tanh %24 : vector<8x128xf32>
    %26 = vector.extract_strided_slice %23 {offsets = [0, 0], sizes = [8, 128], strides = [1, 1]} : vector<8x384xf32> to vector<8x128xf32>
    %27 = vector.extract_strided_slice %23 {offsets = [0, 128], sizes = [8, 128], strides = [1, 1]} : vector<8x384xf32> to vector<8x128xf32>
    %28 = vector.extract_strided_slice %23 {offsets = [0, 256], sizes = [8, 128], strides = [1, 1]} : vector<8x384xf32> to vector<8x128xf32>
    %29 = arith.mulf %27, %12 : vector<8x128xf32>
    %30 = arith.mulf %26, %25 : vector<8x128xf32>
    %31 = arith.addf %29, %30 : vector<8x128xf32>
    %32 = math.tanh %31 : vector<8x128xf32>
    %33 = arith.mulf %28, %32 : vector<8x128xf32>
    %34 = arith.truncf %33 : vector<8x128xf32> to vector<8x128xbf16>
    %cst_18 = arith.constant dense<0.000000e+00> : vector<8x512xf32>
    %35 = tpu.matmul %34, %8, %cst_18 {dimension_numbers = #tpu.dot_dimension_numbers<[1], [0], [0], [1], [0, 0, 1, 1], [], []>} : vector<8x128xbf16>, vector<128x512xbf16>, vector<8x512xf32> -> vector<8x512xf32>
    %36 = arith.addf %7, %35 : vector<8x512xf32>
    %37 = vector.extract_strided_slice %36 {offsets = [0, 0], sizes = [8, 384], strides = [1, 1]} : vector<8x512xf32> to vector<8x384xf32>
    %cst_19 = arith.constant 5.000000e-01 : f32
    %38 = vector.broadcast %cst_19 : f32 to vector<8x384xf32>
    %39 = arith.mulf %38, %37 : vector<8x384xf32>
    %40 = math.tanh %39 : vector<8x384xf32>
    %cst_20 = arith.constant 5.000000e-01 : f32
    %41 = vector.broadcast %cst_20 : f32 to vector<8x384xf32>
    %42 = arith.mulf %41, %40 : vector<8x384xf32>
    %cst_21 = arith.constant 5.000000e-01 : f32
    %43 = vector.broadcast %cst_21 : f32 to vector<8x384xf32>
    %44 = arith.addf %42, %43 : vector<8x384xf32>
    %45 = vector.extract_strided_slice %36 {offsets = [0, 384], sizes = [8, 128], strides = [1, 1]} : vector<8x512xf32> to vector<8x128xf32>
    %46 = math.tanh %45 : vector<8x128xf32>
    %47 = vector.extract_strided_slice %44 {offsets = [0, 0], sizes = [8, 128], strides = [1, 1]} : vector<8x384xf32> to vector<8x128xf32>
    %48 = vector.extract_strided_slice %44 {offsets = [0, 128], sizes = [8, 128], strides = [1, 1]} : vector<8x384xf32> to vector<8x128xf32>
    %49 = vector.extract_strided_slice %44 {offsets = [0, 256], sizes = [8, 128], strides = [1, 1]} : vector<8x384xf32> to vector<8x128xf32>
    %50 = arith.mulf %48, %31 : vector<8x128xf32>
    %51 = arith.mulf %47, %46 : vector<8x128xf32>
    %52 = arith.addf %50, %51 : vector<8x128xf32>
    %53 = math.tanh %52 : vector<8x128xf32>
    %54 = arith.mulf %49, %53 : vector<8x128xf32>
    %c0_22 = arith.constant 0 : index
    %c0_23 = arith.constant 0 : index
    %c0_24 = arith.constant 0 : index
    %55 = vector.load %arg7[%c0_22, %c0_23, %c0_24] : memref<2x8x128xf32, #tpu.memory_space<vmem>>, vector<1x8x128xf32>
    %56 = vector.shape_cast %55 : vector<1x8x128xf32> to vector<8x128xf32>
    %57 = vector.shape_cast %54 : vector<8x128xf32> to vector<1x8x128xf32>
    tpu.vector_store %arg7[%c0_22, %c0_23, %c0_24], %57 {strides = array<i32>} : memref<2x8x128xf32, #tpu.memory_space<vmem>>, vector<1x8x128xf32>,
    %c0_25 = arith.constant 0 : index
    %c0_26 = arith.constant 0 : index
    %c0_27 = arith.constant 0 : index
    %58 = vector.load %arg8[%c0_25, %c0_26, %c0_27] : memref<2x8x128xf32, #tpu.memory_space<vmem>>, vector<1x8x128xf32>
    %59 = vector.shape_cast %58 : vector<1x8x128xf32> to vector<8x128xf32>
    %60 = vector.shape_cast %52 : vector<8x128xf32> to vector<1x8x128xf32>
    tpu.vector_store %arg8[%c0_25, %c0_26, %c0_27], %60 {strides = array<i32>} : memref<2x8x128xf32, #tpu.memory_space<vmem>>, vector<1x8x128xf32>,
    %c1 = arith.constant 1 : index
    %c0_28 = arith.constant 0 : index
    %c0_29 = arith.constant 0 : index
    %61 = vector.load %arg6[%c1, %c0_28, %c0_29] : memref<2x1x512xf32, #tpu.memory_space<vmem>>, vector<1x1x512xf32>
    %62 = vector.shape_cast %61 : vector<1x1x512xf32> to vector<1x512xf32>
    %63 = arith.truncf %54 : vector<8x128xf32> to vector<8x128xbf16>
    %c0_30 = arith.constant 0 : index
    %c0_31 = arith.constant 0 : index
    %c0_32 = arith.constant 0 : index
    %c0_33 = arith.constant 0 : index
    %64 = vector.load %arg5[%c0_30, %c0_31, %c0_32, %c0_33] : memref<1x3x128x512xbf16, #tpu.memory_space<vmem>>, vector<1x1x128x512xbf16>
    %65 = vector.shape_cast %64 : vector<1x1x128x512xbf16> to vector<128x512xbf16>
    %cst_34 = arith.constant dense<0.000000e+00> : vector<8x512xf32>
    %66 = tpu.matmul %63, %65, %cst_34 {dimension_numbers = #tpu.dot_dimension_numbers<[1], [0], [0], [1], [0, 0, 1, 1], [], []>} : vector<8x128xbf16>, vector<128x512xbf16>, vector<8x512xf32> -> vector<8x512xf32>
    %c1_35 = arith.constant 1 : index
    %c0_36 = arith.constant 0 : index
    %c0_37 = arith.constant 0 : index
    %67 = vector.load %arg1[%c1_35, %c0_36, %c0_37] : memref<2x8x128xf32, #tpu.memory_space<vmem>>, vector<1x8x128xf32>
    %68 = vector.shape_cast %67 : vector<1x8x128xf32> to vector<8x128xf32>
    %69 = arith.truncf %68 : vector<8x128xf32> to vector<8x128xbf16>
    %c0_38 = arith.constant 0 : index
    %c1_39 = arith.constant 1 : index
    %c0_40 = arith.constant 0 : index
    %c0_41 = arith.constant 0 : index
    %70 = vector.load %arg5[%c0_38, %c1_39, %c0_40, %c0_41] : memref<1x3x128x512xbf16, #tpu.memory_space<vmem>>, vector<1x1x128x512xbf16>
    %71 = vector.shape_cast %70 : vector<1x1x128x512xbf16> to vector<128x512xbf16>
    %cst_42 = arith.constant dense<0.000000e+00> : vector<8x512xf32>
    %72 = tpu.matmul %69, %71, %cst_42 {dimension_numbers = #tpu.dot_dimension_numbers<[1], [0], [0], [1], [0, 0, 1, 1], [], []>} : vector<8x128xbf16>, vector<128x512xbf16>, vector<8x512xf32> -> vector<8x512xf32>
    %73 = arith.addf %66, %72 : vector<8x512xf32>
    %74 = vector.broadcast %62 : vector<1x512xf32> to vector<8x512xf32>
    %75 = arith.addf %73, %74 : vector<8x512xf32>
    %c1_43 = arith.constant 1 : index
    %c0_44 = arith.constant 0 : index
    %c0_45 = arith.constant 0 : index
    %76 = vector.load %arg2[%c1_43, %c0_44, %c0_45] : memref<2x8x128xf32, #tpu.memory_space<vmem>>, vector<1x8x128xf32>
    %77 = vector.shape_cast %76 : vector<1x8x128xf32> to vector<8x128xf32>
    %78 = vector.extract_strided_slice %75 {offsets = [0, 0], sizes = [8, 384], strides = [1, 1]} : vector<8x512xf32> to vector<8x384xf32>
    %cst_46 = arith.constant 5.000000e-01 : f32
    %79 = vector.broadcast %cst_46 : f32 to vector<8x384xf32>
    %80 = arith.mulf %79, %78 : vector<8x384xf32>
    %81 = math.tanh %80 : vector<8x384xf32>
    %cst_47 = arith.constant 5.000000e-01 : f32
    %82 = vector.broadcast %cst_47 : f32 to vector<8x384xf32>
    %83 = arith.mulf %82, %81 : vector<8x384xf32>
    %cst_48 = arith.constant 5.000000e-01 : f32
    %84 = vector.broadcast %cst_48 : f32 to vector<8x384xf32>
    %85 = arith.addf %83, %84 : vector<8x384xf32>
    %86 = vector.extract_strided_slice %75 {offsets = [0, 384], sizes = [8, 128], strides = [1, 1]} : vector<8x512xf32> to vector<8x128xf32>
    %87 = math.tanh %86 : vector<8x128xf32>
    %88 = vector.extract_strided_slice %85 {offsets = [0, 0], sizes = [8, 128], strides = [1, 1]} : vector<8x384xf32> to vector<8x128xf32>
    %89 = vector.extract_strided_slice %85 {offsets = [0, 128], sizes = [8, 128], strides = [1, 1]} : vector<8x384xf32> to vector<8x128xf32>
    %90 = vector.extract_strided_slice %85 {offsets = [0, 256], sizes = [8, 128], strides = [1, 1]} : vector<8x384xf32> to vector<8x128xf32>
    %91 = arith.mulf %89, %77 : vector<8x128xf32>
    %92 = arith.mulf %88, %87 : vector<8x128xf32>
    %93 = arith.addf %91, %92 : vector<8x128xf32>
    %94 = math.tanh %93 : vector<8x128xf32>
    %95 = arith.mulf %90, %94 : vector<8x128xf32>
    %96 = arith.truncf %95 : vector<8x128xf32> to vector<8x128xbf16>
    %c0_49 = arith.constant 0 : index
    %c2 = arith.constant 2 : index
    %c0_50 = arith.constant 0 : index
    %c0_51 = arith.constant 0 : index
    %97 = vector.load %arg5[%c0_49, %c2, %c0_50, %c0_51] : memref<1x3x128x512xbf16, #tpu.memory_space<vmem>>, vector<1x1x128x512xbf16>
    %98 = vector.shape_cast %97 : vector<1x1x128x512xbf16> to vector<128x512xbf16>
    %cst_52 = arith.constant dense<0.000000e+00> : vector<8x512xf32>
    %99 = tpu.matmul %96, %98, %cst_52 {dimension_numbers = #tpu.dot_dimension_numbers<[1], [0], [0], [1], [0, 0, 1, 1], [], []>} : vector<8x128xbf16>, vector<128x512xbf16>, vector<8x512xf32> -> vector<8x512xf32>
    %100 = vector.broadcast %62 : vector<1x512xf32> to vector<8x512xf32>
    %101 = arith.addf %99, %100 : vector<8x512xf32>
    %102 = vector.extract_strided_slice %101 {offsets = [0, 0], sizes = [8, 384], strides = [1, 1]} : vector<8x512xf32> to vector<8x384xf32>
    %cst_53 = arith.constant 5.000000e-01 : f32
    %103 = vector.broadcast %cst_53 : f32 to vector<8x384xf32>
    %104 = arith.mulf %103, %102 : vector<8x384xf32>
    %105 = math.tanh %104 : vector<8x384xf32>
    %cst_54 = arith.constant 5.000000e-01 : f32
    %106 = vector.broadcast %cst_54 : f32 to vector<8x384xf32>
    %107 = arith.mulf %106, %105 : vector<8x384xf32>
    %cst_55 = arith.constant 5.000000e-01 : f32
    %108 = vector.broadcast %cst_55 : f32 to vector<8x384xf32>
    %109 = arith.addf %107, %108 : vector<8x384xf32>
    %110 = vector.extract_strided_slice %101 {offsets = [0, 384], sizes = [8, 128], strides = [1, 1]} : vector<8x512xf32> to vector<8x128xf32>
    %111 = math.tanh %110 : vector<8x128xf32>
    %112 = vector.extract_strided_slice %109 {offsets = [0, 0], sizes = [8, 128], strides = [1, 1]} : vector<8x384xf32> to vector<8x128xf32>
    %113 = vector.extract_strided_slice %109 {offsets = [0, 128], sizes = [8, 128], strides = [1, 1]} : vector<8x384xf32> to vector<8x128xf32>
    %114 = vector.extract_strided_slice %109 {offsets = [0, 256], sizes = [8, 128], strides = [1, 1]} : vector<8x384xf32> to vector<8x128xf32>
    %115 = arith.mulf %113, %93 : vector<8x128xf32>
    %116 = arith.mulf %112, %111 : vector<8x128xf32>
    %117 = arith.addf %115, %116 : vector<8x128xf32>
    %118 = math.tanh %117 : vector<8x128xf32>
    %119 = arith.mulf %114, %118 : vector<8x128xf32>
    %c1_56 = arith.constant 1 : index
    %c0_57 = arith.constant 0 : index
    %c0_58 = arith.constant 0 : index
    %120 = vector.load %arg7[%c1_56, %c0_57, %c0_58] : memref<2x8x128xf32, #tpu.memory_space<vmem>>, vector<1x8x128xf32>
    %121 = vector.shape_cast %120 : vector<1x8x128xf32> to vector<8x128xf32>
    %122 = vector.shape_cast %119 : vector<8x128xf32> to vector<1x8x128xf32>
    tpu.vector_store %arg7[%c1_56, %c0_57, %c0_58], %122 {strides = array<i32>} : memref<2x8x128xf32, #tpu.memory_space<vmem>>, vector<1x8x128xf32>,
    %c1_59 = arith.constant 1 : index
    %c0_60 = arith.constant 0 : index
    %c0_61 = arith.constant 0 : index
    %123 = vector.load %arg8[%c1_59, %c0_60, %c0_61] : memref<2x8x128xf32, #tpu.memory_space<vmem>>, vector<1x8x128xf32>
    %124 = vector.shape_cast %123 : vector<1x8x128xf32> to vector<8x128xf32>
    %125 = vector.shape_cast %117 : vector<8x128xf32> to vector<1x8x128xf32>
    tpu.vector_store %arg8[%c1_59, %c0_60, %c0_61], %125 {strides = array<i32>} : memref<2x8x128xf32, #tpu.memory_space<vmem>>, vector<1x8x128xf32>,
    return
  }
}

</mosaic_0001>

<bundles_post_ra>
// kernel: selfies_encoder_forward.1
= control target key start
LH: loop header
LB: loop body
LE: loop exit
PB: predicated region body
PF: predicated region fallthrough
CT: control target
= control target key end

     0   :  { %14 = vsyncpa [#allocation3], 0  ;;  %s2251_s0 = inlined_call_operand.vmem [shape: f32[8,32], index: 0, kind: input, shape index: {}]   ;;  %s2252_s1 = inlined_call_operand.vmem [shape: f32[2,8,128], index: 1, kind: input, shape index: {}, may-alias: {1,7}]   ;;  %s2253_s2 = inlined_call_operand.vmem [shape: f32[2,8,128], index: 2, kind: input, shape index: {}, may-alias: {2,8}]   ;;  %s2254_s3 = inlined_call_operand.hbm [shape: bf16[32,512], index: 3, kind: input, shape index: {}]   ;;  %s2255_s4 = inlined_call_operand.hbm [shape: bf16[128,512], index: 4, kind: input, shape index: {}]   ;;  %s2256_s5 = inlined_call_operand.hbm [shape: bf16[1,3,128,512], index: 5, kind: input, shape index: {}]   ;;  %s2257_s6 = inlined_call_operand.vmem [shape: f32[2,1,512], index: 6, kind: input, shape index: {}]   ;;  %s2258_s7 = inlined_call_operand.vmem [shape: f32[2,8,128], index: 7, kind: output, shape index: {0}, may-alias: {1,7}]   ;;  %s2259_s8 = inlined_call_operand.vmem [shape: f32[2,8,128], index: 8, kind: output, shape index: {1}, may-alias: {2,8}]  }
   0x1   :  { %15 = vsyncpa [#allocation5], 0  ;;  %s2005_s27 = smov [#allocation4]   ;;  %s2006_s29 = smov [#allocation2]  }
   0x2   :  { %s39_s28 = sshll.u32 %s2005_s27, 4  ;;  %s27_s30 = sshll.u32 %s2006_s29, 4  ;;  %s40_s28 = int_to_ptr.vmem [resolvable:$true] %s39_s28  ;;  %s2056_s30 = int_to_ptr.vmem [resolvable:$true] %s27_s30 }
   0x3   :  { %s1935_s11 = scalar_lea.hbm %s2255_s4, 4096 }
   0x4   :  { %p1936_p0 = scmp.ne.s32.totalorder %s2255_s4, %s1935_s11  ;;  %p1939_p1 = scmp.lt.u32.totalorder %s1935_s11, %s2255_s4 }
   0x6   :  { %p1941_p2 = pnand %p1939_p1, %p1936_p0 }
   0x8   :  { %1944 = shalt.err (!%p1941_p2)
}
   0x9   :  { %s1945_s16 = scalar_lea.vmem %s40_s28, 4096  ;;  %p1950_p4 = scmp.lt.s32.totalorder %s40_s28, %s40_s28 }
   0xa   :  { %p1946_p3 = scmp.ne.s32.totalorder %s40_s28, %s1945_s16  ;;  %p1951_p5 = scmp.lt.s32.totalorder %s1945_s16, %s1945_s16 }
   0xc   :  { %p1952_p6 = por %p1951_p5, %p1950_p4 }
   0xe   :  { %p1953_p7 = pnand %p1952_p6, %p1946_p3 }
  0x10   :  { %1956 = shalt.err (!%p1953_p7)
}
  0x11   :  { %s2007_s17 = smov 256   ;;  %s2008_s18 = smov 16  }
  0x12   :  { %45 = dma.hbm_to_vmem [thread:$0]  %s2255_s4, 4096, %s40_s28, [#allocation5], %s2007_s17, %s2007_s17, %s2008_s18  }
  0x13   :  { %s1957_s23 = scalar_lea.hbm %s2254_s3, 1024 }
  0x14   :  { %p1958_p8 = scmp.ne.s32.totalorder %s2254_s3, %s1957_s23  ;;  %p1961_p9 = scmp.lt.u32.totalorder %s1957_s23, %s2254_s3 }
  0x16   :  { %p1963_p10 = pnand %p1961_p9, %p1958_p8 }
  0x18   :  { %1966 = shalt.err (!%p1963_p10)
}
  0x19   :  { %s1967_s29 = scalar_lea.vmem %s2056_s30, 1024  ;;  %p1972_p12 = scmp.lt.s32.totalorder %s2056_s30, %s2056_s30 }
  0x1a   :  { %p1968_p11 = scmp.ne.s32.totalorder %s2056_s30, %s1967_s29  ;;  %p1973_p13 = scmp.lt.s32.totalorder %s1967_s29, %s1967_s29 }
  0x1c   :  { %p1974_p0 = por %p1973_p13, %p1972_p12 }
  0x1e   :  { %p1975_p1 = pnand %p1974_p0, %p1968_p11 }
  0x20   :  { %1978 = shalt.err (!%p1975_p1)
}
  0x21   :  { %33 = dma.hbm_to_vmem [thread:$0]  %s2254_s3, 1024, %s2056_s30, [#allocation3], %s2007_s17, %s2007_s17, %s2008_s18  }
  0x22   :  { %s2009_s9 = smov [#allocation6]   ;;  %s1979_s13 = scalar_lea.hbm %s2256_s5, 12288 }
  0x23   :  { %s51_s10 = sshll.u32 %s2009_s9, 4  ;;  %p1980_p2 = scmp.ne.s32.totalorder %s2256_s5, %s1979_s13  ;;  %s52_s10 = int_to_ptr.vmem [resolvable:$true] %s51_s10 }
  0x24   :  { %p1983_p3 = scmp.lt.u32.totalorder %s1979_s13, %s2256_s5 }
  0x26   :  { %p1985_p4 = pnand %p1983_p3, %p1980_p2 }
  0x28   :  { %1988 = shalt.err (!%p1985_p4)
}
  0x29   :  { %s1989_s20 = scalar_lea.vmem %s52_s10, 12288  ;;  %p1994_p6 = scmp.lt.s32.totalorder %s52_s10, %s52_s10 }
  0x2a   :  { %p1990_p5 = scmp.ne.s32.totalorder %s52_s10, %s1989_s20  ;;  %p1995_p7 = scmp.lt.s32.totalorder %s1989_s20, %s1989_s20 }
  0x2c   :  { %p1996_p8 = por %p1995_p7, %p1994_p6 }
  0x2e   :  { %p1997_p9 = pnand %p1996_p8, %p1990_p5 }
  0x30   :  { %2000 = shalt.err (!%p1997_p9)
}
  0x31   :  { %57 = dma.hbm_to_vmem [thread:$0]  %s2256_s5, 12288, %s52_s10, [#allocation5], %s2007_s17, %s2007_s17, %s2008_s18  }
  0x32   :  { %2001 = dma.done.wait [#allocation3], 1024  }
  0x33   :  { %2002 = vsyncadd [#allocation3], 4294966272 }
  0x34   :  { %2003 = dma.done.wait [#allocation5], 16384  }
  0x35   :  { %2004 = vsyncadd [#allocation5], 4294950912  ;;  %v2010_v0 = vmov 0   ;;  %v1691_v1 = vld [vmem:[#allocation2 + $0x4] ss:$16 sps:$4 sm:$0xff]   ;;  %vm142_vm0 = vcmask 261120   ;;  %v82_v55 = vlaneseq }
  0x36   :  { %178 = vmatprep.mubr.bf16.mxu0 %v2010_v0  ;;  %219 = vmatprep.mubr.bf16.mxu1 %v2010_v0  ;;  %v1693_v2 = vld [vmem:[#allocation2 + $0xc] ss:$16 sps:$4 sm:$0xff]   ;;  %v1695_v3 = vld [vmem:[#allocation2] ss:$16 sps:$4 sm:$0xff]   ;;  %v1696_v4 = vld [vmem:[#allocation2 + $0x8] ss:$16 sps:$4 sm:$0xff]  }
  0x37   :  { %146 = vmatprep.subr.bf16.mxu0 %v1691_v1  ;;  %187 = vmatprep.subr.bf16.mxu1 %v1693_v2  ;;  %v1697_v5 = vld [vmem:[#allocation2 + $0x24] ss:$16 sps:$4 sm:$0xff]   ;;  %v1699_v6 = vld [vmem:[#allocation2 + $0x2c] ss:$16 sps:$4 sm:$0xff]   ;;  %v1701_v7 = vld [vmem:[#allocation2 + $0x20] ss:$16 sps:$4 sm:$0xff]  }
  0x38   :  { %147 = vmatpush1.bf16.msra.mxu0 %v1695_v3  ;;  %188 = vmatpush1.bf16.msra.mxu1 %v1696_v4  ;;  %v1702_v8 = vld [vmem:[#allocation2 + $0x28] ss:$16 sps:$4 sm:$0xff]   ;;  %v70_v9 = vld [vmem:[%s2251_s0] sm:$0xff]  ;;  %v2119_v14 = vld [vmem:[#allocation4 + $0xc] ss:$16 sps:$4 sm:$0xff]   ;;  %v2164_v56 = vshrl.u32 %v82_v55, 7 }
  0x39   :  { %148 = vmatprep.subr.bf16.mxu0 %v1697_v5  ;;  %189 = vmatprep.subr.bf16.mxu1 %v1699_v6  ;;  %v2113_v10 = vld [vmem:[#allocation4] ss:$16 sps:$4 sm:$0xff]   ;;  %v2115_v11 = vld [vmem:[#allocation4 + $0x4] ss:$16 sps:$4 sm:$0xff]   ;;  %v71_v12 = vpack.c.bf16 %v70_v9, %v70_v9  ;;  %v2117_v13 = vld [vmem:[#allocation4 + $0x8] ss:$16 sps:$4 sm:$0xff]  }
  0x3a   :  { %v2122_v15 = vld [vmem:[#allocation4 + $0x24] ss:$16 sps:$4 sm:$0xff]   ;;  %v2125_v16 = vld [vmem:[#allocation4 + $0x2c] ss:$16 sps:$4 sm:$0xff]   ;;  %v2127_v17 = vld [vmem:[#allocation4 + $0x20] ss:$16 sps:$4 sm:$0xff]  }
  0x3b   :  { %v2131_v18 = vld [vmem:[#allocation4 + $0x28] ss:$16 sps:$4 sm:$0xff]   ;;  %v2135_v19 = vld [vmem:[#allocation4 + $0x44] ss:$16 sps:$4 sm:$0xff]   ;;  %v2137_v20 = vld [vmem:[#allocation4 + $0x4c] ss:$16 sps:$4 sm:$0xff]  }
  0x3c   :  { %149 = vmatpush1.bf16.msra.mxu0 %v1701_v7  ;;  %190 = vmatpush1.bf16.msra.mxu1 %v1702_v8  ;;  %v2141_v21 = vld [vmem:[#allocation4 + $0x40] ss:$16 sps:$4 sm:$0xff]   ;;  %v1718_v22 = vld [vmem:[#allocation4 + $0x48] ss:$16 sps:$4 sm:$0xff]   ;;  %v1723_v23 = vld [vmem:[#allocation4 + $0x64] ss:$16 sps:$4 sm:$0xff]  }
  0x3d   :  { %423 = vmatprep.subr.bf16.mxu0 %v2115_v11  ;;  %464 = vmatprep.subr.bf16.mxu1 %v2119_v14  ;;  %v1726_v24 = vld [vmem:[#allocation4 + $0x6c] ss:$16 sps:$4 sm:$0xff]   ;;  %v1721_v25 = vld [vmem:[#allocation4 + $0x60] ss:$16 sps:$4 sm:$0xff]   ;;  %v1724_v26 = vld [vmem:[#allocation4 + $0x68] ss:$16 sps:$4 sm:$0xff]  }
  0x3e   :  { %v1729_v27 = vld [vmem:[#allocation4 + $0x84] ss:$16 sps:$4 sm:$0xff]   ;;  %v1732_v28 = vld [vmem:[#allocation4 + $0x8c] ss:$16 sps:$4 sm:$0xff]   ;;  %v1727_v29 = vld [vmem:[#allocation4 + $0x80] ss:$16 sps:$4 sm:$0xff]  }
  0x3f   :  { %1550 = vmatmul.mubr.msk.bf16.vlgmr.msra.gmra.mrb[0].mxu0 %vm142_vm0, %v71_v12  ;;  %1551 = vmatmul.mubr.msk.bf16.vlgmr.msra.gmra.mrb[0].mxu1 %vm142_vm0, %v71_v12  ;;  %v1730_v30 = vld [vmem:[#allocation4 + $0x88] ss:$16 sps:$4 sm:$0xff]   ;;  %v1735_v31 = vld [vmem:[#allocation4 + $0xa4] ss:$16 sps:$4 sm:$0xff]   ;;  %v1738_v32 = vld [vmem:[#allocation4 + $0xac] ss:$16 sps:$4 sm:$0xff]  }
  0x40   :  { %424 = vmatpush1.bf16.msra.mxu0 %v2113_v10  ;;  %465 = vmatpush1.bf16.msra.mxu1 %v2117_v13  ;;  %v1733_v33 = vld [vmem:[#allocation4 + $0xa0] ss:$16 sps:$4 sm:$0xff]   ;;  %v1736_v34 = vld [vmem:[#allocation4 + $0xa8] ss:$16 sps:$4 sm:$0xff]   ;;  %v1741_v35 = vld [vmem:[#allocation4 + $0xc4] ss:$16 sps:$4 sm:$0xff]  }
  0x41   :  { %425 = vmatprep.subr.bf16.mxu0 %v2122_v15  ;;  %466 = vmatprep.subr.bf16.mxu1 %v2125_v16  ;;  %v1744_v36 = vld [vmem:[#allocation4 + $0xcc] ss:$16 sps:$4 sm:$0xff]   ;;  %v1739_v37 = vld [vmem:[#allocation4 + $0xc0] ss:$16 sps:$4 sm:$0xff]   ;;  %v1742_v38 = vld [vmem:[#allocation4 + $0xc8] ss:$16 sps:$4 sm:$0xff]  }
  0x42   :  { %455 = vmatprep.mubr.bf16.mxu0 %v2010_v0  ;;  %496 = vmatprep.mubr.bf16.mxu1 %v2010_v0  ;;  %v1747_v39 = vld [vmem:[#allocation4 + $0xe4] ss:$16 sps:$4 sm:$0xff]   ;;  %v1750_v40 = vld [vmem:[#allocation4 + $0xec] ss:$16 sps:$4 sm:$0xff]   ;;  %v1745_v41 = vld [vmem:[#allocation4 + $0xe0] ss:$16 sps:$4 sm:$0xff]  }
  0x43   :  { %v1748_v42 = vld [vmem:[#allocation4 + $0xe8] ss:$16 sps:$4 sm:$0xff]   ;;  %v260_v43 = vld [vmem:[%s2252_s1] sm:$0xff]  ;;  %v1756_v46 = vld [vmem:[#allocation6 + $0x10c] ss:$16 sps:$4 sm:$0xff]   ;;  %v84_v57 = vsub.s32 0, %v2164_v56 }
  0x44   :  { %426 = vmatpush1.bf16.msra.mxu0 %v2127_v17  ;;  %467 = vmatpush1.bf16.msra.mxu1 %v2131_v18  ;;  %v262_v44 = vpack.c.bf16 %v260_v43, %v260_v43  ;;  %v1753_v45 = vld [vmem:[#allocation6 + $0x104] ss:$16 sps:$4 sm:$0xff]   ;;  %v80_v58 = vld [vmem:[%s2257_s6] sm:$0xf]  ;;  %v88_v59 = vsub.s32 1, %v2164_v56  ;;  %v96_v61 = vsub.s32 3, %v2164_v56 }
  0x45   :  { %427 = vmatprep.subr.bf16.mxu0 %v2135_v19  ;;  %468 = vmatprep.subr.bf16.mxu1 %v2137_v20  ;;  %v85_v60 = vrot.slane %v80_v58, %v84_v57  ;;  %v92_v3 = vsub.s32 2, %v2164_v56  ;;  %v1757_v43 = vld [vmem:[#allocation6 + $0x120] ss:$16 sps:$4 sm:$0xff]  }
  0x46   :  { %v89_v62 = vrot.slane %v80_v58, %v88_v59  ;;  %v97_v1 = vrot.slane %v80_v58, %v96_v61  ;;  %v1775_v55 = vld [vmem:[#allocation6 + $0x180] ss:$16 sps:$4 sm:$0xff]  }
  0x48   :  { %428 = vmatpush1.bf16.msra.mxu0 %v2141_v21  ;;  %469 = vmatpush1.bf16.msra.mxu1 %v1718_v22 }
  0x49   :  { %429 = vmatprep.subr.bf16.mxu0 %v1723_v23  ;;  %470 = vmatprep.subr.bf16.mxu1 %v1726_v24 }
  0x4c   :  { %430 = vmatpush1.bf16.msra.mxu0 %v1721_v25  ;;  %471 = vmatpush1.bf16.msra.mxu1 %v1724_v26 }
  0x4d   :  { %431 = vmatprep.subr.bf16.mxu0 %v1729_v27  ;;  %472 = vmatprep.subr.bf16.mxu1 %v1732_v28 }
  0x50   :  { %432 = vmatpush1.bf16.msra.mxu0 %v1727_v29  ;;  %473 = vmatpush1.bf16.msra.mxu1 %v1730_v30 }
  0x51   :  { %433 = vmatprep.subr.bf16.mxu0 %v1735_v31  ;;  %474 = vmatprep.subr.bf16.mxu1 %v1738_v32 }
  0x54   :  { %434 = vmatpush1.bf16.msra.mxu0 %v1733_v33  ;;  %475 = vmatpush1.bf16.msra.mxu1 %v1736_v34 }
  0x55   :  { %435 = vmatprep.subr.bf16.mxu0 %v1741_v35  ;;  %476 = vmatprep.subr.bf16.mxu1 %v1744_v36 }
  0x58   :  { %436 = vmatpush1.bf16.msra.mxu0 %v1739_v37  ;;  %477 = vmatpush1.bf16.msra.mxu1 %v1742_v38 }
  0x59   :  { %437 = vmatprep.subr.bf16.mxu0 %v1747_v39  ;;  %478 = vmatprep.subr.bf16.mxu1 %v1750_v40 }
  0x5c   :  { %438 = vmatpush1.bf16.msra.mxu0 %v1745_v41  ;;  %479 = vmatpush1.bf16.msra.mxu1 %v1748_v42 }
  0x5d   :  { %528 = vmatprep.subr.bf16.mxu0 %v2115_v11  ;;  %569 = vmatprep.subr.bf16.mxu1 %v2119_v14 }
  0x5f   :  { %456 = vmatmul.mubr.bf16.vlgmr.msra.gmra.mrb[4].mxu0 %v262_v44  ;;  %497 = vmatmul.mubr.bf16.vlgmr.msra.gmra.mrb[4].mxu1 %v262_v44  ;;  %v1760_v44 = vld [vmem:[#allocation6 + $0x128] ss:$16 sps:$4 sm:$0xff]  }
  0x60   :  { %529 = vmatpush1.bf16.msra.mxu0 %v2113_v10  ;;  %570 = vmatpush1.bf16.msra.mxu1 %v2117_v13 }
  0x61   :  { %530 = vmatprep.subr.bf16.mxu0 %v2122_v15  ;;  %571 = vmatprep.subr.bf16.mxu1 %v2125_v16  ;;  %v93_v16 = vrot.slane %v80_v58, %v92_v3  ;;  %v1778_v58 = vld [vmem:[#allocation6 + $0x188] ss:$16 sps:$4 sm:$0xff]  }
  0x62   :  { %560 = vmatprep.mubr.bf16.mxu0 %v2010_v0  ;;  %601 = vmatprep.mubr.bf16.mxu1 %v2010_v0 }
  0x64   :  { %531 = vmatpush1.bf16.msra.mxu0 %v2127_v17  ;;  %572 = vmatpush1.bf16.msra.mxu1 %v2131_v18 }
  0x65   :  { %532 = vmatprep.subr.bf16.mxu0 %v2135_v19  ;;  %573 = vmatprep.subr.bf16.mxu1 %v2137_v20 }
  0x68   :  { %533 = vmatpush1.bf16.msra.mxu0 %v2141_v21  ;;  %574 = vmatpush1.bf16.msra.mxu1 %v1718_v22 }
  0x69   :  { %534 = vmatprep.subr.bf16.mxu0 %v1723_v23  ;;  %575 = vmatprep.subr.bf16.mxu1 %v1726_v24 }
  0x6c   :  { %535 = vmatpush1.bf16.msra.mxu0 %v1721_v25  ;;  %576 = vmatpush1.bf16.msra.mxu1 %v1724_v26 }
  0x6d   :  { %536 = vmatprep.subr.bf16.mxu0 %v1729_v27  ;;  %577 = vmatprep.subr.bf16.mxu1 %v1732_v28  ;;  %v261_v28 = vld [vmem:[%s2253_s2] sm:$0xff] }
  0x70   :  { %537 = vmatpush1.bf16.msra.mxu0 %v1727_v29  ;;  %578 = vmatpush1.bf16.msra.mxu1 %v1730_v30 }
  0x71   :  { %538 = vmatprep.subr.bf16.mxu0 %v1735_v31  ;;  %579 = vmatprep.subr.bf16.mxu1 %v1738_v32 }
  0x74   :  { %539 = vmatpush1.bf16.msra.mxu0 %v1733_v33  ;;  %580 = vmatpush1.bf16.msra.mxu1 %v1736_v34 }
  0x75   :  { %540 = vmatprep.subr.bf16.mxu0 %v1741_v35  ;;  %581 = vmatprep.subr.bf16.mxu1 %v1744_v36 }
  0x78   :  { %541 = vmatpush1.bf16.msra.mxu0 %v1739_v37  ;;  %582 = vmatpush1.bf16.msra.mxu1 %v1742_v38  ;;  %v1751_v38 = vld [vmem:[#allocation6 + $0x100] ss:$16 sps:$4 sm:$0xff]  }
  0x79   :  { %542 = vmatprep.subr.bf16.mxu0 %v1747_v39  ;;  %583 = vmatprep.subr.bf16.mxu1 %v1750_v40  ;;  %v1754_v39 = vld [vmem:[#allocation6 + $0x108] ss:$16 sps:$4 sm:$0xff]  }
  0x7c   :  { %543 = vmatpush1.bf16.msra.mxu0 %v1745_v41  ;;  %584 = vmatpush1.bf16.msra.mxu1 %v1748_v42  ;;  %v1759_v41 = vld [vmem:[#allocation6 + $0x124] ss:$16 sps:$4 sm:$0xff]   ;;  %v1762_v42 = vld [vmem:[#allocation6 + $0x12c] ss:$16 sps:$4 sm:$0xff]  }
  0x7d   :  { %865 = vmatprep.subr.bf16.mxu0 %v1753_v45  ;;  %906 = vmatprep.subr.bf16.mxu1 %v1756_v46  ;;  %v1765_v45 = vld [vmem:[#allocation6 + $0x144] ss:$16 sps:$4 sm:$0xff]   ;;  %v1768_v46 = vld [vmem:[#allocation6 + $0x14c] ss:$16 sps:$4 sm:$0xff]  }
 0x112   :  { %v180_v47 = vpop.f32.mrb[0].mxu0  ;;  %v221_v48 = vpop.f32.mrb[0].mxu1 }
 0x113   :  { %v182_v49 = vpop.f32.mrb[1].mxu0  ;;  %v223_v50 = vpop.f32.mrb[1].mxu1  ;;  %v2176_v63 = vadd.f32 %v180_v47, %v85_v60  ;;  %v2190_v19 = vadd.f32 %v221_v48, %v93_v16  ;;  %v1763_v47 = vld [vmem:[#allocation6 + $0x140] ss:$16 sps:$4 sm:$0xff]   ;;  %v1766_v48 = vld [vmem:[#allocation6 + $0x148] ss:$16 sps:$4 sm:$0xff]  }
 0x114   :  { %v184_v51 = vpop.f32.mrb[2].mxu0  ;;  %v225_v52 = vpop.f32.mrb[2].mxu1  ;;  %v2180_v2 = vadd.f32 %v182_v49, %v89_v62  ;;  %v2185_v12 = vadd.f32 %v223_v50, %v97_v1  ;;  %v1771_v49 = vld [vmem:[#allocation6 + $0x164] ss:$16 sps:$4 sm:$0xff]   ;;  %v1774_v50 = vld [vmem:[#allocation6 + $0x16c] ss:$16 sps:$4 sm:$0xff]  }
 0x115   :  { %v185_v53 = vpop.f32.mrb[3].mxu0  ;;  %v226_v54 = vpop.f32.mrb[3].mxu1  ;;  %v1769_v51 = vld [vmem:[#allocation6 + $0x160] ss:$16 sps:$4 sm:$0xff]   ;;  %v1772_v52 = vld [vmem:[#allocation6 + $0x168] ss:$16 sps:$4 sm:$0xff]  }
 0x116   :  { %v1777_v53 = vld [vmem:[#allocation6 + $0x184] ss:$16 sps:$4 sm:$0xff]   ;;  %v1780_v54 = vld [vmem:[#allocation6 + $0x18c] ss:$16 sps:$4 sm:$0xff]   ;;  %v1781_v1 = vld [vmem:[#allocation6 + $0x1a0] ss:$16 sps:$4 sm:$0xff]  }
 0x117   :  { %v1783_v60 = vld [vmem:[#allocation6 + $0x1a4] ss:$16 sps:$4 sm:$0xff]   ;;  %v1786_v62 = vld [vmem:[#allocation6 + $0x1ac] ss:$16 sps:$4 sm:$0xff]  }
 0x118   :  { %v1801_v16 = vld [vmem:[#allocation6 + $0x4] ss:$16 sps:$4 sm:$0xff]  }
 0x132   :  { %v457_v4 = vpop.f32.mrb[4].mxu0  ;;  %v498_v5 = vpop.f32.mrb[4].mxu1 }
 0x133   :  { %v505_v6 = vadd.f32 %v457_v4, %v2176_v63  ;;  %v459_v7 = vpop.f32.mrb[5].mxu0  ;;  %v500_v8 = vpop.f32.mrb[5].mxu1  ;;  %v507_v20 = vadd.f32 %v498_v5, %v2190_v19  ;;  %v1784_v4 = vld [vmem:[#allocation6 + $0x1a8] ss:$16 sps:$4 sm:$0xff]   ;;  %v1789_v5 = vld [vmem:[#allocation6 + $0x1c4] ss:$16 sps:$4 sm:$0xff]  }
 0x134   :  { %v506_v9 = vadd.f32 %v459_v7, %v2180_v2  ;;  %v461_v10 = vpop.f32.mrb[6].mxu0  ;;  %v502_v11 = vpop.f32.mrb[6].mxu1  ;;  %v508_v18 = vadd.f32 %v500_v8, %v2185_v12  ;;  %v1792_v7 = vld [vmem:[#allocation6 + $0x1cc] ss:$16 sps:$4 sm:$0xff]   ;;  %v1790_v8 = vld [vmem:[#allocation6 + $0x1c8] ss:$16 sps:$4 sm:$0xff]  }
 0x135   :  { %v509_v13 = vmul.f32 0.5, %v505_v6  ;;  %v462_v14 = vpop.f32.mrb[7].mxu0  ;;  %v503_v15 = vpop.f32.mrb[7].mxu1  ;;  %v511_v21 = vmul.f32 0.5, %v507_v20  ;;  %v1787_v6 = vld [vmem:[#allocation6 + $0x1c0] ss:$16 sps:$4 sm:$0xff]  }
 0x136   :  { %v510_v17 = vmul.f32 0.5, %v506_v9  ;;  %v1795_v9 = vld [vmem:[#allocation6 + $0x1e4] ss:$16 sps:$4 sm:$0xff]   ;;  %v1793_v10 = vld [vmem:[#allocation6 + $0x1e0] ss:$16 sps:$4 sm:$0xff]   ;;  %v1585_v14 = vld [vmem:[%s2252_s1 + $0x8] sm:$0xff] }
 0x137   :  { %1895 = vtanh.f32 %v509_v13  ;;  %v1798_v11 = vld [vmem:[#allocation6 + $0x1ec] ss:$16 sps:$4 sm:$0xff]   ;;  %v1796_v13 = vld [vmem:[#allocation6 + $0x1e8] ss:$16 sps:$4 sm:$0xff]   ;;  %v671_v15 = vpack.c.bf16 %v1585_v14, %v1585_v14 }
 0x138   :  { %1897 = vtanh.f32 %v510_v17  ;;  %v1804_v17 = vld [vmem:[#allocation6 + $0xc] ss:$16 sps:$4 sm:$0xff]   ;;  %v1802_v20 = vld [vmem:[#allocation6 + $0x8] ss:$16 sps:$4 sm:$0xff]  }
 0x139   :  { %1899 = vtanh.f32 %v508_v18  ;;  %v1799_v18 = vld [vmem:[#allocation6] ss:$16 sps:$4 sm:$0xff]  }
 0x13a   :  { %1901 = vtanh.f32 %v511_v21  ;;  %v1807_v21 = vld [vmem:[#allocation6 + $0x24] ss:$16 sps:$4 sm:$0xff]  }
 0x141   :  { %v1896_v22 = vpop.eup %1895 }
 0x142   :  { %v515_v23 = vmul.f32 0.5, %v1896_v22  ;;  %v1898_v24 = vpop.eup %1897  ;;  %v1810_v22 = vld [vmem:[#allocation6 + $0x2c] ss:$16 sps:$4 sm:$0xff]  }
 0x143   :  { %v516_v26 = vmul.f32 0.5, %v1898_v24  ;;  %v1900_v27 = vpop.eup %1899  ;;  %v1808_v24 = vld [vmem:[#allocation6 + $0x28] ss:$16 sps:$4 sm:$0xff]  }
 0x144   :  { %v518_v25 = vadd.f32 0.5, %v515_v23  ;;  %v1902_v33 = vpop.eup %1901  ;;  %v1805_v23 = vld [vmem:[#allocation6 + $0x20] ss:$16 sps:$4 sm:$0xff]  }
 0x145   :  { %v519_v29 = vadd.f32 0.5, %v516_v26  ;;  %v517_v34 = vmul.f32 0.5, %v1902_v33  ;;  %v1816_v26 = vld [vmem:[#allocation6 + $0x4c] ss:$16 sps:$4 sm:$0xff]   ;;  %v1820_v33 = vld [vmem:[#allocation6 + $0x68] ss:$16 sps:$4 sm:$0xff]  }
 0x146   :  { %v523_v30 = vmul.f32 %v1900_v27, %v518_v25  ;;  %v1813_v25 = vld [vmem:[#allocation6 + $0x44] ss:$16 sps:$4 sm:$0xff]   ;;  %v1811_v27 = vld [vmem:[#allocation6 + $0x40] ss:$16 sps:$4 sm:$0xff]  }
 0x147   :  { %v522_v31 = vmul.f32 %v519_v29, %v261_v28  ;;  %v520_v35 = vadd.f32 0.5, %v517_v34  ;;  %v1814_v28 = vld [vmem:[#allocation6 + $0x48] ss:$16 sps:$4 sm:$0xff]   ;;  %v1819_v29 = vld [vmem:[#allocation6 + $0x64] ss:$16 sps:$4 sm:$0xff]  }
 0x148   :  { %v1825_v34 = vld [vmem:[#allocation6 + $0x84] ss:$16 sps:$4 sm:$0xff]  }
 0x149   :  { %v2196_v32 = vadd.f32 %v523_v30, %v522_v31  ;;  %v1822_v30 = vld [vmem:[#allocation6 + $0x6c] ss:$16 sps:$4 sm:$0xff]   ;;  %v1817_v31 = vld [vmem:[#allocation6 + $0x60] ss:$16 sps:$4 sm:$0xff]  }
 0x14b   :  { %1903 = vtanh.f32 %v2196_v32 }
 0x155   :  { %v1904_v36 = vpop.eup %1903 }
 0x156   :  { %v526_v37 = vmul.f32 %v1904_v36, %v520_v35  ;;  %v1828_v35 = vld [vmem:[#allocation6 + $0x8c] ss:$16 sps:$4 sm:$0xff]   ;;  %v1823_v36 = vld [vmem:[#allocation6 + $0x80] ss:$16 sps:$4 sm:$0xff]  }
 0x158   :  { %v527_v40 = vpack.c.bf16 %v526_v37, %v526_v37  ;;  %v1826_v37 = vld [vmem:[#allocation6 + $0x88] ss:$16 sps:$4 sm:$0xff]  }
 0x15a   :  { %561 = vmatmul.mubr.bf16.vlgmr.msra.gmra.mrb[8].mxu0 %v527_v40  ;;  %602 = vmatmul.mubr.bf16.vlgmr.msra.gmra.mrb[8].mxu1 %v527_v40  ;;  %v1832_v40 = vld [vmem:[#allocation6 + $0xa8] ss:$16 sps:$4 sm:$0xff]  }
 0x15b   :  { %866 = vmatpush1.bf16.msra.mxu0 %v1751_v38  ;;  %907 = vmatpush1.bf16.msra.mxu1 %v1754_v39  ;;  %v1829_v38 = vld [vmem:[#allocation6 + $0xa0] ss:$16 sps:$4 sm:$0xff]   ;;  %v1831_v39 = vld [vmem:[#allocation6 + $0xa4] ss:$16 sps:$4 sm:$0xff]  }
 0x15c   :  { %867 = vmatprep.subr.bf16.mxu0 %v1759_v41  ;;  %908 = vmatprep.subr.bf16.mxu1 %v1762_v42  ;;  %v1834_v41 = vld [vmem:[#allocation6 + $0xac] ss:$16 sps:$4 sm:$0xff]   ;;  %v1837_v42 = vld [vmem:[#allocation6 + $0xc4] ss:$16 sps:$4 sm:$0xff]  }
 0x15d   :  { %897 = vmatprep.mubr.bf16.mxu0 %v2010_v0  ;;  %938 = vmatprep.mubr.bf16.mxu1 %v2010_v0 }
 0x15f   :  { %868 = vmatpush1.bf16.msra.mxu0 %v1757_v43  ;;  %909 = vmatpush1.bf16.msra.mxu1 %v1760_v44  ;;  %v1840_v43 = vld [vmem:[#allocation6 + $0xcc] ss:$16 sps:$4 sm:$0xff]   ;;  %v1835_v44 = vld [vmem:[#allocation6 + $0xc0] ss:$16 sps:$4 sm:$0xff]  }
 0x160   :  { %869 = vmatprep.subr.bf16.mxu0 %v1765_v45  ;;  %910 = vmatprep.subr.bf16.mxu1 %v1768_v46  ;;  %v1838_v45 = vld [vmem:[#allocation6 + $0xc8] ss:$16 sps:$4 sm:$0xff]   ;;  %v1843_v46 = vld [vmem:[#allocation6 + $0xe4] ss:$16 sps:$4 sm:$0xff]  }
 0x163   :  { %870 = vmatpush1.bf16.msra.mxu0 %v1763_v47  ;;  %911 = vmatpush1.bf16.msra.mxu1 %v1766_v48  ;;  %v1846_v47 = vld [vmem:[#allocation6 + $0xec] ss:$16 sps:$4 sm:$0xff]   ;;  %v1841_v48 = vld [vmem:[#allocation6 + $0xe0] ss:$16 sps:$4 sm:$0xff]  }
 0x164   :  { %871 = vmatprep.subr.bf16.mxu0 %v1771_v49  ;;  %912 = vmatprep.subr.bf16.mxu1 %v1774_v50  ;;  %v1844_v49 = vld [vmem:[#allocation6 + $0xe8] ss:$16 sps:$4 sm:$0xff]  }
 0x167   :  { %872 = vmatpush1.bf16.msra.mxu0 %v1769_v51  ;;  %913 = vmatpush1.bf16.msra.mxu1 %v1772_v52 }
 0x168   :  { %873 = vmatprep.subr.bf16.mxu0 %v1777_v53  ;;  %914 = vmatprep.subr.bf16.mxu1 %v1780_v54 }
 0x16b   :  { %874 = vmatpush1.bf16.msra.mxu0 %v1775_v55  ;;  %915 = vmatpush1.bf16.msra.mxu1 %v1778_v58 }
 0x16c   :  { %875 = vmatprep.subr.bf16.mxu0 %v1783_v60  ;;  %916 = vmatprep.subr.bf16.mxu1 %v1786_v62 }
 0x16f   :  { %876 = vmatpush1.bf16.msra.mxu0 %v1781_v1  ;;  %917 = vmatpush1.bf16.msra.mxu1 %v1784_v4 }
 0x170   :  { %877 = vmatprep.subr.bf16.mxu0 %v1789_v5  ;;  %918 = vmatprep.subr.bf16.mxu1 %v1792_v7 }
 0x173   :  { %878 = vmatpush1.bf16.msra.mxu0 %v1787_v6  ;;  %919 = vmatpush1.bf16.msra.mxu1 %v1790_v8 }
 0x174   :  { %879 = vmatprep.subr.bf16.mxu0 %v1795_v9  ;;  %920 = vmatprep.subr.bf16.mxu1 %v1798_v11 }
 0x177   :  { %880 = vmatpush1.bf16.msra.mxu0 %v1793_v10  ;;  %921 = vmatpush1.bf16.msra.mxu1 %v1796_v13 }
 0x178   :  { %1107 = vmatprep.subr.bf16.mxu0 %v1801_v16  ;;  %1148 = vmatprep.subr.bf16.mxu1 %v1804_v17 }
 0x17a   :  { %898 = vmatmul.mubr.bf16.vlgmr.msra.gmra.mrb[12].mxu0 %v671_v15  ;;  %939 = vmatmul.mubr.bf16.vlgmr.msra.gmra.mrb[12].mxu1 %v671_v15 }
 0x17b   :  { %1139 = vmatprep.mubr.bf16.mxu0 %v2010_v0  ;;  %1108 = vmatpush1.bf16.msra.mxu0 %v1799_v18 }
 0x17c   :  { %1149 = vmatpush1.bf16.msra.mxu1 %v1802_v20  ;;  %1180 = vmatprep.mubr.bf16.mxu1 %v2010_v0 }
 0x17d   :  { %1109 = vmatprep.subr.bf16.mxu0 %v1807_v21  ;;  %1150 = vmatprep.subr.bf16.mxu1 %v1810_v22 }
 0x17f   :  { %1110 = vmatpush1.bf16.msra.mxu0 %v1805_v23 }
 0x180   :  { %1151 = vmatpush1.bf16.msra.mxu1 %v1808_v24  ;;  %1111 = vmatprep.subr.bf16.mxu0 %v1813_v25 }
 0x181   :  { %1152 = vmatprep.subr.bf16.mxu1 %v1816_v26 }
 0x183   :  { %1112 = vmatpush1.bf16.msra.mxu0 %v1811_v27 }
 0x184   :  { %1153 = vmatpush1.bf16.msra.mxu1 %v1814_v28  ;;  %1113 = vmatprep.subr.bf16.mxu0 %v1819_v29 }
 0x185   :  { %1154 = vmatprep.subr.bf16.mxu1 %v1822_v30  ;;  %v1849_v30 = vld [vmem:[#allocation6 + $0x204] ss:$16 sps:$4 sm:$0xff]  }
 0x187   :  { %1114 = vmatpush1.bf16.msra.mxu0 %v1817_v31  ;;  %v1852_v31 = vld [vmem:[#allocation6 + $0x20c] ss:$16 sps:$4 sm:$0xff]  }
 0x188   :  { %1155 = vmatpush1.bf16.msra.mxu1 %v1820_v33  ;;  %1115 = vmatprep.subr.bf16.mxu0 %v1825_v34  ;;  %v1847_v33 = vld [vmem:[#allocation6 + $0x200] ss:$16 sps:$4 sm:$0xff]   ;;  %v1850_v34 = vld [vmem:[#allocation6 + $0x208] ss:$16 sps:$4 sm:$0xff]  }
 0x189   :  { %1156 = vmatprep.subr.bf16.mxu1 %v1828_v35  ;;  %v1858_v35 = vld [vmem:[#allocation6 + $0x22c] ss:$16 sps:$4 sm:$0xff]  }
 0x18b   :  { %1116 = vmatpush1.bf16.msra.mxu0 %v1823_v36  ;;  %v1853_v36 = vld [vmem:[#allocation6 + $0x220] ss:$16 sps:$4 sm:$0xff]  }
 0x18c   :  { %1157 = vmatpush1.bf16.msra.mxu1 %v1826_v37  ;;  %1117 = vmatprep.subr.bf16.mxu0 %v1831_v39  ;;  %v1856_v37 = vld [vmem:[#allocation6 + $0x228] ss:$16 sps:$4 sm:$0xff]   ;;  %v1864_v39 = vld [vmem:[#allocation6 + $0x24c] ss:$16 sps:$4 sm:$0xff]  }
 0x18d   :  { %1158 = vmatprep.subr.bf16.mxu1 %v1834_v41  ;;  %v1862_v41 = vld [vmem:[#allocation6 + $0x248] ss:$16 sps:$4 sm:$0xff]  }
 0x18f   :  { %1118 = vmatpush1.bf16.msra.mxu0 %v1829_v38  ;;  %v1861_v38 = vld [vmem:[#allocation6 + $0x244] ss:$16 sps:$4 sm:$0xff]  }
 0x190   :  { %1159 = vmatpush1.bf16.msra.mxu1 %v1832_v40  ;;  %1119 = vmatprep.subr.bf16.mxu0 %v1837_v42  ;;  %v1859_v40 = vld [vmem:[#allocation6 + $0x240] ss:$16 sps:$4 sm:$0xff]   ;;  %v1867_v42 = vld [vmem:[#allocation6 + $0x264] ss:$16 sps:$4 sm:$0xff]  }
 0x191   :  { %1160 = vmatprep.subr.bf16.mxu1 %v1840_v43  ;;  %v1870_v43 = vld [vmem:[#allocation6 + $0x26c] ss:$16 sps:$4 sm:$0xff]  }
 0x193   :  { %1120 = vmatpush1.bf16.msra.mxu0 %v1835_v44  ;;  %v1865_v44 = vld [vmem:[#allocation6 + $0x260] ss:$16 sps:$4 sm:$0xff]  }
 0x194   :  { %1161 = vmatpush1.bf16.msra.mxu1 %v1838_v45  ;;  %1121 = vmatprep.subr.bf16.mxu0 %v1843_v46  ;;  %v1868_v45 = vld [vmem:[#allocation6 + $0x268] ss:$16 sps:$4 sm:$0xff]   ;;  %v1873_v46 = vld [vmem:[#allocation6 + $0x284] ss:$16 sps:$4 sm:$0xff]  }
 0x195   :  { %1162 = vmatprep.subr.bf16.mxu1 %v1846_v47  ;;  %v1876_v47 = vld [vmem:[#allocation6 + $0x28c] ss:$16 sps:$4 sm:$0xff]  }
 0x197   :  { %1122 = vmatpush1.bf16.msra.mxu0 %v1841_v48  ;;  %v1871_v48 = vld [vmem:[#allocation6 + $0x280] ss:$16 sps:$4 sm:$0xff]  }
 0x198   :  { %1163 = vmatpush1.bf16.msra.mxu1 %v1844_v49  ;;  %1428 = vmatprep.subr.bf16.mxu0 %v1849_v30  ;;  %v1874_v49 = vld [vmem:[#allocation6 + $0x288] ss:$16 sps:$4 sm:$0xff]  }
 0x199   :  { %1469 = vmatprep.subr.bf16.mxu1 %v1852_v31 }
 0x22d   :  { %v562_v50 = vpop.f32.mrb[8].mxu0  ;;  %v603_v51 = vpop.f32.mrb[8].mxu1 }
 0x22e   :  { %v610_v52 = vadd.f32 %v562_v50, %v2176_v63  ;;  %v564_v53 = vpop.f32.mrb[9].mxu0  ;;  %v605_v54 = vpop.f32.mrb[9].mxu1  ;;  %v612_v7 = vadd.f32 %v603_v51, %v2190_v19  ;;  %v1877_v50 = vld [vmem:[#allocation6 + $0x2a0] ss:$16 sps:$4 sm:$0xff]   ;;  %v1879_v51 = vld [vmem:[#allocation6 + $0x2a4] ss:$16 sps:$4 sm:$0xff]  }
 0x22f   :  { %v611_v55 = vadd.f32 %v564_v53, %v2180_v2  ;;  %v566_v58 = vpop.f32.mrb[10].mxu0  ;;  %v607_v60 = vpop.f32.mrb[10].mxu1  ;;  %v613_v6 = vadd.f32 %v605_v54, %v2185_v12  ;;  %v1882_v53 = vld [vmem:[#allocation6 + $0x2ac] ss:$16 sps:$4 sm:$0xff]   ;;  %v1885_v54 = vld [vmem:[#allocation6 + $0x2c4] ss:$16 sps:$4 sm:$0xff]  }
 0x230   :  { %v614_v62 = vmul.f32 0.5, %v610_v52  ;;  %v567_v1 = vpop.f32.mrb[11].mxu0  ;;  %v608_v4 = vpop.f32.mrb[11].mxu1  ;;  %v616_v8 = vmul.f32 0.5, %v612_v7  ;;  %v1880_v52 = vld [vmem:[#allocation6 + $0x2a8] ss:$16 sps:$4 sm:$0xff]  }
 0x231   :  { %v615_v5 = vmul.f32 0.5, %v611_v55  ;;  %v1888_v55 = vld [vmem:[#allocation6 + $0x2cc] ss:$16 sps:$4 sm:$0xff]   ;;  %v1883_v58 = vld [vmem:[#allocation6 + $0x2c0] ss:$16 sps:$4 sm:$0xff]  }
 0x232   :  { %1905 = vtanh.f32 %v614_v62  ;;  %v1886_v60 = vld [vmem:[#allocation6 + $0x2c8] ss:$16 sps:$4 sm:$0xff]   ;;  %v1891_v62 = vld [vmem:[#allocation6 + $0x2e4] ss:$16 sps:$4 sm:$0xff]   ;;  %v1894_v1 = vld [vmem:[#allocation6 + $0x2ec] ss:$16 sps:$4 sm:$0xff]  }
 0x233   :  { %1907 = vtanh.f32 %v615_v5  ;;  %v1889_v4 = vld [vmem:[#allocation6 + $0x2e0] ss:$16 sps:$4 sm:$0xff]   ;;  %v1892_v5 = vld [vmem:[#allocation6 + $0x2e8] ss:$16 sps:$4 sm:$0xff]  }
 0x234   :  { %1909 = vtanh.f32 %v613_v6  ;;  %v1584_v6 = vld [vmem:[%s2257_s6 + $0x4] sm:$0xf] }
 0x235   :  { %1911 = vtanh.f32 %v616_v8  ;;  %v1193_v7 = vrot.slane %v1584_v6, %v84_v57  ;;  %v1205_v57 = vrot.slane %v1584_v6, %v96_v61 }
 0x23c   :  { %v1906_v9 = vpop.eup %1905 }
 0x23d   :  { %v620_v63 = vmul.f32 0.5, %v1906_v9  ;;  %v1908_v10 = vpop.eup %1907 }
 0x23e   :  { %v621_v2 = vmul.f32 0.5, %v1908_v10  ;;  %v1910_v13 = vpop.eup %1909 }
 0x23f   :  { %v623_v11 = vadd.f32 0.5, %v620_v63  ;;  %v1912_v12 = vpop.eup %1911  ;;  %v1197_v63 = vrot.slane %v1584_v6, %v88_v59 }
 0x240   :  { %v624_v14 = vadd.f32 0.5, %v621_v2  ;;  %v622_v19 = vmul.f32 0.5, %v1912_v12 }
 0x241   :  { %v628_v15 = vmul.f32 %v1910_v13, %v623_v11 }
 0x242   :  { %v627_v16 = vmul.f32 %v624_v14, %v2196_v32  ;;  %v625_v18 = vadd.f32 0.5, %v622_v19 }
 0x244   :  { %v629_v17 = vadd.f32 %v628_v15, %v627_v16 }
 0x246   :  { %1913 = vtanh.f32 %v629_v17  ;;  %633 = vst [vmem:[%s2259_s8] sm:$0xff] %v629_v17 }
 0x24d   :  { %v2219_v32 = vpop.f32.mrb[12].mxu0  ;;  %v2223_v26 = vpop.f32.mrb[12].mxu1  ;;  %v1650_v30 = vld [vmem:[%s2253_s2 + $0x8] sm:$0xff] }
 0x24e   :  { %v2221_v23 = vpop.f32.mrb[13].mxu0  ;;  %v2225_v27 = vpop.f32.mrb[13].mxu1 }
 0x24f   :  { %v903_v24 = vpop.f32.mrb[14].mxu0  ;;  %v944_v28 = vpop.f32.mrb[14].mxu1 }
 0x250   :  { %v1914_v20 = vpop.eup %1913  ;;  %v904_v25 = vpop.f32.mrb[15].mxu0 }
 0x251   :  { %v631_v21 = vmul.f32 %v1914_v20, %v625_v18  ;;  %v945_v29 = vpop.f32.mrb[15].mxu1 }
 0x253   :  { %632 = vst [vmem:[%s2258_s7] sm:$0xff] %v631_v21  ;;  %v636_v22 = vpack.c.bf16 %v631_v21, %v631_v21 }
 0x255   :  { %1140 = vmatmul.mubr.bf16.vlgmr.msra.gmra.mrb[16].mxu0 %v636_v22  ;;  %1181 = vmatmul.mubr.bf16.vlgmr.msra.gmra.mrb[16].mxu1 %v636_v22 }
 0x256   :  { %1460 = vmatprep.mubr.bf16.mxu0 %v2010_v0  ;;  %1501 = vmatprep.mubr.bf16.mxu1 %v2010_v0  ;;  %v1855_v0 = vld [vmem:[#allocation6 + $0x224] ss:$16 sps:$4 sm:$0xff]  }
 0x257   :  { %1429 = vmatpush1.bf16.msra.mxu0 %v1847_v33  ;;  %1470 = vmatpush1.bf16.msra.mxu1 %v1850_v34 }
 0x258   :  { %1430 = vmatprep.subr.bf16.mxu0 %v1855_v0  ;;  %1471 = vmatprep.subr.bf16.mxu1 %v1858_v35 }
 0x25b   :  { %1431 = vmatpush1.bf16.msra.mxu0 %v1853_v36  ;;  %1472 = vmatpush1.bf16.msra.mxu1 %v1856_v37 }
 0x25c   :  { %1432 = vmatprep.subr.bf16.mxu0 %v1861_v38  ;;  %1473 = vmatprep.subr.bf16.mxu1 %v1864_v39 }
 0x25f   :  { %1433 = vmatpush1.bf16.msra.mxu0 %v1859_v40  ;;  %1474 = vmatpush1.bf16.msra.mxu1 %v1862_v41 }
 0x260   :  { %1434 = vmatprep.subr.bf16.mxu0 %v1867_v42  ;;  %1475 = vmatprep.subr.bf16.mxu1 %v1870_v43 }
 0x263   :  { %1435 = vmatpush1.bf16.msra.mxu0 %v1865_v44  ;;  %1476 = vmatpush1.bf16.msra.mxu1 %v1868_v45 }
 0x264   :  { %1436 = vmatprep.subr.bf16.mxu0 %v1873_v46  ;;  %1477 = vmatprep.subr.bf16.mxu1 %v1876_v47 }
 0x267   :  { %1437 = vmatpush1.bf16.msra.mxu0 %v1871_v48  ;;  %1478 = vmatpush1.bf16.msra.mxu1 %v1874_v49 }
 0x268   :  { %1438 = vmatprep.subr.bf16.mxu0 %v1879_v51  ;;  %1479 = vmatprep.subr.bf16.mxu1 %v1882_v53 }
 0x26b   :  { %1439 = vmatpush1.bf16.msra.mxu0 %v1877_v50  ;;  %1480 = vmatpush1.bf16.msra.mxu1 %v1880_v52 }
 0x26c   :  { %1440 = vmatprep.subr.bf16.mxu0 %v1885_v54  ;;  %1481 = vmatprep.subr.bf16.mxu1 %v1888_v55 }
 0x26f   :  { %1441 = vmatpush1.bf16.msra.mxu0 %v1883_v58  ;;  %1482 = vmatpush1.bf16.msra.mxu1 %v1886_v60 }
 0x270   :  { %1442 = vmatprep.subr.bf16.mxu0 %v1891_v62  ;;  %1483 = vmatprep.subr.bf16.mxu1 %v1894_v1 }
 0x273   :  { %1443 = vmatpush1.bf16.msra.mxu0 %v1889_v4  ;;  %1484 = vmatpush1.bf16.msra.mxu1 %v1892_v5 }
 0x328   :  { %v1141_v8 = vpop.f32.mrb[16].mxu0  ;;  %v1182_v9 = vpop.f32.mrb[16].mxu1 }
 0x329   :  { %v1142_v10 = vadd.f32 %v1141_v8, %v2219_v32  ;;  %v1183_v11 = vadd.f32 %v1182_v9, %v2223_v26  ;;  %v1143_v2 = vpop.f32.mrb[17].mxu0  ;;  %v1184_v13 = vpop.f32.mrb[17].mxu1  ;;  %v1201_v32 = vrot.slane %v1584_v6, %v92_v3 }
 0x32a   :  { %v1144_v14 = vadd.f32 %v1143_v2, %v2221_v23  ;;  %v1185_v15 = vadd.f32 %v1184_v13, %v2225_v27  ;;  %v1145_v16 = vpop.f32.mrb[18].mxu0  ;;  %v1186_v17 = vpop.f32.mrb[18].mxu1 }
 0x32b   :  { %v1210_v12 = vadd.f32 %v1193_v7, %v1142_v10  ;;  %v1146_v19 = vpop.f32.mrb[19].mxu0  ;;  %v1187_v18 = vpop.f32.mrb[19].mxu1  ;;  %v1212_v23 = vadd.f32 %v1201_v32, %v1183_v11 }
 0x32c   :  { %v1211_v20 = vadd.f32 %v1197_v63, %v1144_v14  ;;  %v1213_v22 = vadd.f32 %v1205_v57, %v1185_v15 }
 0x32d   :  { %v1216_v59 = vmul.f32 0.5, %v1210_v12  ;;  %v1218_v24 = vmul.f32 0.5, %v1212_v23 }
 0x32e   :  { %v1217_v21 = vmul.f32 0.5, %v1211_v20 }
 0x32f   :  { %1915 = vtanh.f32 %v1216_v59 }
 0x330   :  { %1917 = vtanh.f32 %v1217_v21 }
 0x331   :  { %1919 = vtanh.f32 %v1213_v22 }
 0x332   :  { %1921 = vtanh.f32 %v1218_v24 }
 0x339   :  { %v1916_v25 = vpop.eup %1915 }
 0x33a   :  { %v1222_v26 = vmul.f32 0.5, %v1916_v25  ;;  %v1918_v27 = vpop.eup %1917 }
 0x33b   :  { %v1223_v61 = vmul.f32 0.5, %v1918_v27  ;;  %v1920_v29 = vpop.eup %1919 }
 0x33c   :  { %v1225_v28 = vadd.f32 0.5, %v1222_v26  ;;  %v1922_v3 = vpop.eup %1921 }
 0x33d   :  { %v1226_v31 = vadd.f32 0.5, %v1223_v61  ;;  %v1224_v0 = vmul.f32 0.5, %v1922_v3 }
 0x33e   :  { %v1230_v33 = vmul.f32 %v1920_v29, %v1225_v28 }
 0x33f   :  { %v1229_v34 = vmul.f32 %v1650_v30, %v1226_v31  ;;  %v1227_v35 = vadd.f32 0.5, %v1224_v0 }
 0x341   :  { %v1231_v56 = vadd.f32 %v1230_v33, %v1229_v34 }
 0x343   :  { %1923 = vtanh.f32 %v1231_v56 }
 0x34d   :  { %v1924_v36 = vpop.eup %1923 }
 0x34e   :  { %v1233_v37 = vmul.f32 %v1924_v36, %v1227_v35 }
 0x350   :  { %v1234_v38 = vpack.c.bf16 %v1233_v37, %v1233_v37 }
 0x352   :  { %1461 = vmatmul.mubr.bf16.vlgmr.msra.gmra.mrb[20].mxu0 %v1234_v38  ;;  %1502 = vmatmul.mubr.bf16.vlgmr.msra.gmra.mrb[20].mxu1 %v1234_v38 }
 0x425   :  { %v1462_v39 = vpop.f32.mrb[20].mxu0  ;;  %v1503_v40 = vpop.f32.mrb[20].mxu1 }
 0x426   :  { %v1463_v41 = vadd.f32 %v1462_v39, %v1193_v7  ;;  %v1464_v42 = vpop.f32.mrb[21].mxu0  ;;  %v1505_v43 = vpop.f32.mrb[21].mxu1  ;;  %v1504_v52 = vadd.f32 %v1503_v40, %v1201_v32 }
 0x427   :  { %v1465_v44 = vadd.f32 %v1464_v42, %v1197_v63  ;;  %v1466_v45 = vpop.f32.mrb[22].mxu0  ;;  %v1507_v46 = vpop.f32.mrb[22].mxu1  ;;  %v1506_v51 = vadd.f32 %v1505_v43, %v1205_v57 }
 0x428   :  { %v1510_v47 = vmul.f32 0.5, %v1463_v41  ;;  %v1467_v48 = vpop.f32.mrb[23].mxu0  ;;  %v1508_v49 = vpop.f32.mrb[23].mxu1  ;;  %v1512_v53 = vmul.f32 0.5, %v1504_v52 }
 0x429   :  { %v1511_v50 = vmul.f32 0.5, %v1465_v44 }
 0x42a   :  { %1925 = vtanh.f32 %v1510_v47 }
 0x42b   :  { %1927 = vtanh.f32 %v1511_v50 }
 0x42c   :  { %1929 = vtanh.f32 %v1506_v51 }
 0x42d   :  { %1931 = vtanh.f32 %v1512_v53 }
 0x434   :  { %v1926_v54 = vpop.eup %1925 }
 0x435   :  { %v1516_v55 = vmul.f32 0.5, %v1926_v54  ;;  %v1928_v58 = vpop.eup %1927 }
 0x436   :  { %v1517_v62 = vmul.f32 0.5, %v1928_v58  ;;  %v1930_v1 = vpop.eup %1929 }
 0x437   :  { %v1519_v60 = vadd.f32 0.5, %v1516_v55  ;;  %v1932_v8 = vpop.eup %1931 }
 0x438   :  { %v1520_v4 = vadd.f32 0.5, %v1517_v62  ;;  %v1518_v9 = vmul.f32 0.5, %v1932_v8 }
 0x439   :  { %v1524_v5 = vmul.f32 %v1930_v1, %v1519_v60 }
 0x43a   :  { %v1523_v6 = vmul.f32 %v1520_v4, %v1231_v56  ;;  %v1521_v63 = vadd.f32 0.5, %v1518_v9 }
 0x43c   :  { %v1525_v7 = vadd.f32 %v1524_v5, %v1523_v6 }
 0x43e   :  { %1933 = vtanh.f32 %v1525_v7  ;;  %1684 = vst [vmem:[%s2259_s8 + $0x8] sm:$0xff] %v1525_v7 }
 0x448   :  { %v1934_v10 = vpop.eup %1933 }
 0x449   :  { %v1527_v11 = vmul.f32 %v1934_v10, %v1521_v63 }
 0x44b   :  { %1683 = vst [vmem:[%s2258_s7 + $0x8] sm:$0xff] %v1527_v11 }
 0x44c   :  { %1540 = vsyncpa [#allocation3], 1 }
 0x44d   :  { %1541 = vsyncpa [#allocation5], 1 }

</bundles_post_ra>
